<compile_context>
chip_gen: v7x
topology: tpu7x:2x2x1
jax: 0.10.0
libtpu: 0.0.40
codegen_flags: <defaults>
</compile_context>

<pallas_src>
import jax
import jax.numpy as jnp
from jax.experimental import pallas as pl
from jax.experimental.pallas import tpu as pltpu


# ----------------------------------------------------------------------------
# VMEM budgeting / compiler params (per-generation: v5e/v6e 128 MiB, v7x 64 MiB)
# ----------------------------------------------------------------------------
def _round_up(x, m):
    return ((x + m - 1) // m) * m


def _vmem_capacity_bytes():
    try:
        return int(pltpu.get_tpu_info().vmem_capacity_bytes)
    except Exception:
        return 64 << 20  # conservative fallback: v7x per-TensorCore VMEM


_VMEM_CAP = _vmem_capacity_bytes()
_VMEM_LIMIT = int(min(_VMEM_CAP * 3 // 4, 96 << 20))  # scoped-VMEM request
_VMEM_BUDGET = int(_VMEM_LIMIT * 0.8)                 # headroom for compiler scratch


def _compiler_params():
    return pltpu.CompilerParams(
        dimension_semantics=("parallel",),  # row axis shards across TensorCores (v7x)
        vmem_limit_bytes=_VMEM_LIMIT,
    )


def _pick_row_tile(n, per_row_bytes, resident_bytes, budget_bytes, cap):
    """Largest row tile fitting the VMEM budget; keeps >=2 grid steps when possible."""
    avail = max(budget_bytes - resident_bytes, 8 * per_row_bytes)
    tn = min(cap, n, avail // max(per_row_bytes, 1))
    if n >= 16:                                   # >=2 grid steps -> megacore sharding
        tn = min(tn, _round_up(pl.cdiv(n, 2), 8))
    if tn < n:                                    # (8,128) rule on the sublane dim
        tn = max(8, (tn // 8) * 8)
        tn = min(tn, n)
    return int(tn)


# ----------------------------------------------------------------------------
# aggregation == 'concat':   X = cat(Xs, -1) @ W.T + b
# Reformulated as            X = sum_l Xs[l] @ Ws[l]  + b   (Ws[l] = W[:, off_l:].T)
# ----------------------------------------------------------------------------
def _make_concat_kernel(num_layers):
    def kernel(*refs):
        x_refs = refs[:num_layers]
        w_refs = refs[num_layers:2 * num_layers]
        b_ref = refs[2 * num_layers]
        o_ref = refs[2 * num_layers + 1]
        acc = None
        for l in range(num_layers):
            x = x_refs[l][...]
            w = w_refs[l][...]
            if x.dtype != w.dtype:
                x = x.astype(w.dtype)  # bf16 MXU operands when slabs are bf16
            part = jnp.dot(x, w, preferred_element_type=jnp.float32)
            acc = part if acc is None else acc + part
        o_ref[...] = (acc + b_ref[...].astype(jnp.float32)).astype(o_ref.dtype)

    return kernel


def prepare_concat_params(W, b, dims, *, mxu_dtype=None, lane_pad=True):
    """One-time param prep: split + transpose + lane-pad the nn.Linear weight.

    W: [out_dim, in_dim] (PyTorch nn.Linear layout), b: [out_dim].
    Returns (Ws, b2) with Ws[l]: [D_l, out_dim_padded], b2: [1, out_dim_padded] (f32).
    """
    out_dim, in_dim = W.shape
    assert sum(dims) == in_dim
    out_p = _round_up(out_dim, 128) if lane_pad else out_dim
    pad = out_p - out_dim
    Ws, off = [], 0
    for d in dims:
        w_l = jnp.transpose(W[:, off:off + d])  # [d, out_dim], contiguous slab
        if pad:
            w_l = jnp.pad(w_l, ((0, 0), (0, pad)))
        if mxu_dtype is not None:
            w_l = w_l.astype(mxu_dtype)
        Ws.append(w_l)
        off += d
    b2 = b.reshape(1, out_dim).astype(jnp.float32)
    if pad:
        b2 = jnp.pad(b2, ((0, 0), (0, pad)))
    return Ws, b2


def dense_concat(Xs, Ws, b2, out_dim, *, max_tn=512):
    num_layers = len(Xs)
    N = Xs[0].shape[0]
    dims = [x.shape[-1] for x in Xs]
    in_dim = sum(dims)
    out_p = Ws[0].shape[1]
    x_bytes = jnp.dtype(Xs[0].dtype).itemsize
    w_bytes = jnp.dtype(Ws[0].dtype).itemsize

    # Resident (constant index-map) operands are double-buffered by the default
    # pipeline -> count them twice in the budget.
    resident = 2 * (in_dim * out_p * w_bytes + out_p * 4)
    per_row = 2 * in_dim * x_bytes + 2 * out_p * x_bytes
    tn = _pick_row_tile(N, per_row, resident, _VMEM_BUDGET, max_tn)

    in_specs = [pl.BlockSpec((tn, d), lambda i: (i, 0)) for d in dims]
    in_specs += [pl.BlockSpec((d, out_p), lambda i: (0, 0)) for d in dims]  # resident weights
    in_specs.append(pl.BlockSpec((1, out_p), lambda i: (0, 0)))             # resident bias

    cost = pl.CostEstimate(
        flops=2 * N * in_dim * out_p,
        transcendentals=0,
        bytes_accessed=(N * in_dim * x_bytes + in_dim * out_p * w_bytes
                        + out_p * 4 + N * out_p * x_bytes),
    )

    y = pl.pallas_call(
        _make_concat_kernel(num_layers),
        out_shape=jax.ShapeDtypeStruct((N, out_p), Xs[0].dtype),
        grid=(pl.cdiv(N, tn),),
        in_specs=in_specs,
        out_specs=pl.BlockSpec((tn, out_p), lambda i: (i, 0)),
        compiler_params=_compiler_params(),
        cost_estimate=cost,
    )(*Xs, *Ws, b2)
    return y if out_p == out_dim else y[:, :out_dim]


# ----------------------------------------------------------------------------
# aggregation == 'maxpool':  X = elementwise max over the layer list
# ----------------------------------------------------------------------------
def _make_maxpool_kernel(num_layers):
    def kernel(*refs):
        x_refs, o_ref = refs[:num_layers], refs[num_layers]
        m = x_refs[0][...]
        for l in range(1, num_layers):
            m = jnp.maximum(m, x_refs[l][...])
        o_ref[...] = m

    return kernel


def dense_maxpool(Xs, *, max_tn=2048):
    num_layers = len(Xs)
    N, D = Xs[0].shape

    # Lane-dense view: maxpool is purely elementwise, so any consistent reshape is
    # valid; D < 128 would otherwise produce masked partial stores (vst.msk).
    work, Nw, Dw, reshaped = Xs, N, D, False
    if D % 128 != 0 and (N * D) % 128 == 0:
        Nw, Dw = (N * D) // 128, 128
        work = [x.reshape(Nw, Dw) for x in Xs]
        reshaped = True

    x_bytes = jnp.dtype(Xs[0].dtype).itemsize
    per_row = 2 * (num_layers + 1) * Dw * x_bytes
    tn = _pick_row_tile(Nw, per_row, 0, _VMEM_BUDGET, max_tn)

    out = pl.pallas_call(
        _make_maxpool_kernel(num_layers),
        out_shape=jax.ShapeDtypeStruct((Nw, Dw), Xs[0].dtype),
        grid=(pl.cdiv(Nw, tn),),
        in_specs=[pl.BlockSpec((tn, Dw), lambda i: (i, 0)) for _ in range(num_layers)],
        out_specs=pl.BlockSpec((tn, Dw), lambda i: (i, 0)),
        compiler_params=_compiler_params(),
    )(*work)
    return out.reshape(N, D) if reshaped else out


# ----------------------------------------------------------------------------
# aggregation == 'attention':
#   score_l = sigmoid(Xs[l] @ w_att + b_att)   [N, 1]
#   X       = sum_l score_l * Xs[l]            [N, D]
# ----------------------------------------------------------------------------
def _make_attention_kernel(num_layers):
    def kernel(*refs):
        x_refs = refs[:num_layers]
        w_ref = refs[num_layers]       # [D, 1], resident VMEM
        b_ref = refs[num_layers + 1]   # [1], SMEM scalar
        o_ref = refs[num_layers + 2]
        b = b_ref[0].astype(jnp.float32)
        in_dtype = x_refs[0].dtype
        # Keep the weighted sum in bf16 when inputs are bf16 (bf16 VALU on v6e/v7x);
        # logits + sigmoid stay f32.
        acc_dtype = in_dtype if in_dtype == jnp.bfloat16 else jnp.float32
        acc = jnp.zeros(o_ref.shape, acc_dtype)
        for l in range(num_layers):
            x = x_refs[l][...]
            # MXU is otherwise idle here: use it for the D-length reduction.
            logit = jnp.dot(x, w_ref[...], preferred_element_type=jnp.float32) + b
            score = jax.nn.sigmoid(logit)                       # [TN, 1], EUP
            acc = acc + score.astype(acc_dtype) * x.astype(acc_dtype)
        o_ref[...] = acc.astype(o_ref.dtype)

    return kernel


def dense_attention(Xs, w_att, b_att, *, max_tn=1024):
    num_layers = len(Xs)
    N, D = Xs[0].shape
    w_col = w_att.reshape(D, 1).astype(Xs[0].dtype)
    b1 = b_att.reshape(1).astype(jnp.float32)

    x_bytes = jnp.dtype(Xs[0].dtype).itemsize
    resident = 2 * D * x_bytes
    per_row = 2 * (num_layers + 1) * D * x_bytes
    tn = _pick_row_tile(N, per_row, resident, _VMEM_BUDGET, max_tn)

    in_specs = [pl.BlockSpec((tn, D), lambda i: (i, 0)) for _ in range(num_layers)]
    in_specs.append(pl.BlockSpec((D, 1), lambda i: (0, 0)))                 # resident w_att
    in_specs.append(pl.BlockSpec(memory_space=pltpu.MemorySpace.SMEM))      # scalar bias

    return pl.pallas_call(
        _make_attention_kernel(num_layers),
        out_shape=jax.ShapeDtypeStruct((N, D), Xs[0].dtype),
        grid=(pl.cdiv(N, tn),),
        in_specs=in_specs,
        out_specs=pl.BlockSpec((tn, D), lambda i: (i, 0)),
        compiler_params=_compiler_params(),
    )(*Xs, w_col, b1)


# ----------------------------------------------------------------------------
# Pure-JAX references (mirror PyTorch semantics) for correctness checks.
# ----------------------------------------------------------------------------
def ref_concat(Xs, W, b):
    return jnp.concatenate(Xs, axis=-1) @ W.T + b


def ref_maxpool(Xs):
    return jnp.max(jnp.stack(Xs, axis=-1), axis=-1)


def ref_attention(Xs, w_att, b_att):
    pps = jnp.stack(Xs, axis=1)                               # [N, L, D]
    logits = jnp.einsum("nld,d->nl", pps, w_att) + b_att      # [N, L]
    score = jax.nn.sigmoid(logits)[:, None, :]                # [N, 1, L]
    return jnp.squeeze(jnp.matmul(score, pps), axis=1)        # [N, D]


if __name__ == "__main__":
    key = jax.random.PRNGKey(0)
    N, D, L = 128, 32, 3            # rows, feature dim per layer, num layers
    out_dim, in_dim = D, L * D

    k_x, k_w, k_b, k_wa, k_ba = jax.random.split(key, 5)

    # Layer outputs (list of [N, D] tensors).
    Xs = list(jax.random.normal(k_x, (L, N, D), dtype=jnp.float32))

    # Module params (shapes as in __init__):
    #  concat:    nn.Linear(in_dim, out_dim)  -> weight [out_dim, in_dim], bias [out_dim]
    #  attention: nn.Linear(out_dim, 1)       -> weight [1, out_dim],      bias [1]
    W = jax.random.normal(k_w, (out_dim, in_dim), dtype=jnp.float32) * 0.05
    b = jax.random.normal(k_b, (out_dim,), dtype=jnp.float32) * 0.05
    w_att = jax.random.normal(k_wa, (out_dim,), dtype=jnp.float32) * 0.05
    b_att = jax.random.normal(k_ba, (1,), dtype=jnp.float32) * 0.05

    dims = [D] * L

    # concat aggregation (f32 MXU operands)
    Ws32, b2 = prepare_concat_params(W, b, dims)
    y_cat = jax.block_until_ready(dense_concat(Xs, Ws32, b2, out_dim))
    assert jnp.allclose(y_cat, ref_concat(Xs, W, b), rtol=1e-4, atol=1e-4)

    # concat aggregation (bf16 MXU operands, f32 accumulation)
    Wsbf, b2bf = prepare_concat_params(W, b, dims, mxu_dtype=jnp.bfloat16)
    y_cat_bf = jax.block_until_ready(dense_concat(Xs, Wsbf, b2bf, out_dim))
    assert jnp.allclose(y_cat_bf, ref_concat(Xs, W, b), rtol=5e-2, atol=5e-2)

    # maxpool aggregation
    y_max = jax.block_until_ready(dense_maxpool(Xs))
    assert jnp.allclose(y_max, ref_maxpool(Xs), rtol=1e-6, atol=1e-6)

    # attention aggregation
    y_att = jax.block_until_ready(dense_attention(Xs, w_att, b_att))
    assert jnp.allclose(y_att, ref_attention(Xs, w_att, b_att), rtol=1e-4, atol=1e-4)

    print("KERNEL_OK")
</pallas_src>

<mosaic_0001>
module attributes {stable_mosaic.version = 11 : i64} {
  func.func @kernel(%arg0: i32, %arg1: memref<64x32xf32, #tpu.memory_space<vmem>>, %arg2: memref<64x32xf32, #tpu.memory_space<vmem>>, %arg3: memref<64x32xf32, #tpu.memory_space<vmem>>, %arg4: memref<32x128xf32, #tpu.memory_space<vmem>>, %arg5: memref<32x128xf32, #tpu.memory_space<vmem>>, %arg6: memref<32x128xf32, #tpu.memory_space<vmem>>, %arg7: memref<1x128xf32, #tpu.memory_space<vmem>>, %arg8: memref<64x128xf32, #tpu.memory_space<vmem>>) attributes {dimension_semantics = [#tpu.dimension_semantics<parallel>], iteration_bounds = array<i64: 2>, scalar_prefetch = 0 : i64, scratch_operands = 0 : i64, tpu.core_type = #tpu.core_type<tc>, window_params = [{transform_indices = @transform_0, window_bounds = array<i64: 64, 32>}, {transform_indices = @transform_1, window_bounds = array<i64: 64, 32>}, {transform_indices = @transform_2, window_bounds = array<i64: 64, 32>}, {pipeline_mode = #tpu.pipeline_mode<synchronous>, transform_indices = @transform_3, window_bounds = array<i64: 32, 128>}, {pipeline_mode = #tpu.pipeline_mode<synchronous>, transform_indices = @transform_4, window_bounds = array<i64: 32, 128>}, {pipeline_mode = #tpu.pipeline_mode<synchronous>, transform_indices = @transform_5, window_bounds = array<i64: 32, 128>}, {pipeline_mode = #tpu.pipeline_mode<synchronous>, transform_indices = @transform_6, window_bounds = array<i64: 1, 128>}, {transform_indices = @transform_7, window_bounds = array<i64: 64, 128>}]} {
    %c0 = arith.constant 0 : index
    %c0_0 = arith.constant 0 : index
    %0 = vector.load %arg1[%c0, %c0_0] : memref<64x32xf32, #tpu.memory_space<vmem>>, vector<64x32xf32>
    %c0_1 = arith.constant 0 : index
    %c0_2 = arith.constant 0 : index
    %1 = vector.load %arg4[%c0_1, %c0_2] : memref<32x128xf32, #tpu.memory_space<vmem>>, vector<32x128xf32>
    %cst = arith.constant dense<0.000000e+00> : vector<64x128xf32>
    %2 = tpu.matmul %0, %1, %cst {dimension_numbers = #tpu.dot_dimension_numbers<[1], [0], [0], [1], [0, 0, 1, 1], [], []>} : vector<64x32xf32>, vector<32x128xf32>, vector<64x128xf32> -> vector<64x128xf32>
    %c0_3 = arith.constant 0 : index
    %c0_4 = arith.constant 0 : index
    %3 = vector.load %arg2[%c0_3, %c0_4] : memref<64x32xf32, #tpu.memory_space<vmem>>, vector<64x32xf32>
    %c0_5 = arith.constant 0 : index
    %c0_6 = arith.constant 0 : index
    %4 = vector.load %arg5[%c0_5, %c0_6] : memref<32x128xf32, #tpu.memory_space<vmem>>, vector<32x128xf32>
    %cst_7 = arith.constant dense<0.000000e+00> : vector<64x128xf32>
    %5 = tpu.matmul %3, %4, %cst_7 {dimension_numbers = #tpu.dot_dimension_numbers<[1], [0], [0], [1], [0, 0, 1, 1], [], []>} : vector<64x32xf32>, vector<32x128xf32>, vector<64x128xf32> -> vector<64x128xf32>
    %6 = arith.addf %2, %5 : vector<64x128xf32>
    %c0_8 = arith.constant 0 : index
    %c0_9 = arith.constant 0 : index
    %7 = vector.load %arg3[%c0_8, %c0_9] : memref<64x32xf32, #tpu.memory_space<vmem>>, vector<64x32xf32>
    %c0_10 = arith.constant 0 : index
    %c0_11 = arith.constant 0 : index
    %8 = vector.load %arg6[%c0_10, %c0_11] : memref<32x128xf32, #tpu.memory_space<vmem>>, vector<32x128xf32>
    %cst_12 = arith.constant dense<0.000000e+00> : vector<64x128xf32>
    %9 = tpu.matmul %7, %8, %cst_12 {dimension_numbers = #tpu.dot_dimension_numbers<[1], [0], [0], [1], [0, 0, 1, 1], [], []>} : vector<64x32xf32>, vector<32x128xf32>, vector<64x128xf32> -> vector<64x128xf32>
    %10 = arith.addf %6, %9 : vector<64x128xf32>
    %c0_13 = arith.constant 0 : index
    %c0_14 = arith.constant 0 : index
    %11 = vector.load %arg7[%c0_13, %c0_14] : memref<1x128xf32, #tpu.memory_space<vmem>>, vector<1x128xf32>
    %12 = vector.broadcast %11 : vector<1x128xf32> to vector<64x128xf32>
    %13 = arith.addf %10, %12 : vector<64x128xf32>
    %c0_15 = arith.constant 0 : index
    %c0_16 = arith.constant 0 : index
    %14 = vector.load %arg8[%c0_15, %c0_16] : memref<64x128xf32, #tpu.memory_space<vmem>>, vector<64x128xf32>
    tpu.vector_store %arg8[%c0_15, %c0_16], %13 {strides = array<i32>} : memref<64x128xf32, #tpu.memory_space<vmem>>, vector<64x128xf32>,
    return
  }
  func.func @transform_0(%arg0: i32) -> (i32, i32) {
    %c0_i32 = arith.constant 0 : i32
    %c0_i32_0 = arith.constant 0 : i32
    return %arg0, %c0_i32 : i32, i32
  }
  func.func @transform_1(%arg0: i32) -> (i32, i32) {
    %c0_i32 = arith.constant 0 : i32
    %c0_i32_0 = arith.constant 0 : i32
    return %arg0, %c0_i32 : i32, i32
  }
  func.func @transform_2(%arg0: i32) -> (i32, i32) {
    %c0_i32 = arith.constant 0 : i32
    %c0_i32_0 = arith.constant 0 : i32
    return %arg0, %c0_i32 : i32, i32
  }
  func.func @transform_3(%arg0: i32) -> (i32, i32) {
    %c0_i32 = arith.constant 0 : i32
    %c0_i32_0 = arith.constant 0 : i32
    %c0_i32_1 = arith.constant 0 : i32
    return %c0_i32, %c0_i32_0 : i32, i32
  }
  func.func @transform_4(%arg0: i32) -> (i32, i32) {
    %c0_i32 = arith.constant 0 : i32
    %c0_i32_0 = arith.constant 0 : i32
    %c0_i32_1 = arith.constant 0 : i32
    return %c0_i32, %c0_i32_0 : i32, i32
  }
  func.func @transform_5(%arg0: i32) -> (i32, i32) {
    %c0_i32 = arith.constant 0 : i32
    %c0_i32_0 = arith.constant 0 : i32
    %c0_i32_1 = arith.constant 0 : i32
    return %c0_i32, %c0_i32_0 : i32, i32
  }
  func.func @transform_6(%arg0: i32) -> (i32, i32) {
    %c0_i32 = arith.constant 0 : i32
    %c0_i32_0 = arith.constant 0 : i32
    %c0_i32_1 = arith.constant 0 : i32
    return %c0_i32, %c0_i32_0 : i32, i32
  }
  func.func @transform_7(%arg0: i32) -> (i32, i32) {
    %c0_i32 = arith.constant 0 : i32
    %c0_i32_0 = arith.constant 0 : i32
    return %arg0, %c0_i32 : i32, i32
  }
}

</mosaic_0001>

<bundles_post_ra>
// kernel: tpu_custom_call.1
= control target key start
LH: loop header
LB: loop body
LE: loop exit
PB: predicated region body
PF: predicated region fallthrough
CT: control target
= control target key end

     0   :  { %12 = vsyncpa [#allocation3], 0  ;;  %s1425_s0 = inlined_call_operand.vmem [shape: f32[128,32], index: 0, kind: input, shape index: {}]   ;;  %s1426_s1 = inlined_call_operand.vmem [shape: f32[128,32], index: 1, kind: input, shape index: {}]   ;;  %s1427_s2 = inlined_call_operand.vmem [shape: f32[128,32], index: 2, kind: input, shape index: {}]   ;;  %s1428_s3 = inlined_call_operand.vmem [shape: f32[32,128], index: 3, kind: input, shape index: {}]   ;;  %s1429_s4 = inlined_call_operand.vmem [shape: f32[32,128], index: 4, kind: input, shape index: {}]   ;;  %s1430_s5 = inlined_call_operand.vmem [shape: f32[32,128], index: 5, kind: input, shape index: {}]   ;;  %s1431_s6 = inlined_call_operand.vmem [shape: f32[1,128], index: 6, kind: input, shape index: {}]   ;;  %s1432_s7 = inlined_call_operand.hbm [shape: f32[128,128], index: 7, kind: output, shape index: {}]  }
   0x1   :  { %14 = vsyncpa [#allocation3 + $0x1], 0  ;;  %s1209_s24 = smov 0   ;;  %s1211_s25 = smov 0  }
   0x2   :  { %s1213_s26 = smov 0   ;;  %s1215_s27 = smov 0  }
   0x3 LB: > { %s1230_s28 = sadd.s32 4294967295, %s1164_s27   ;;  %s879_s29 = sadd.s32 4294967294, %s1164_s27   ;;  %s1164_s27 = sphi %s1215_s27, %s1438_s27   ;;  %s1160_s26 = sphi %s1213_s26, %s1437_s26   ;;  %s1156_s25 = sphi %s1211_s25, %s1436_s25   ;;  %s1152_s24 = sphi %s1209_s24, %s1435_s24  }
   0x4   : > { %s1234_s30 = sadd.s32 1, %s1164_s27   ;;  %s189_s8 = sadd.s32 1, %s1160_s26 }
   0x5   : > { %s186_s9 = ssub.s32 %s1164_s27, %s1234_s30  ;;  %p199_p0 = scmp.ne.s32.totalorder %s1160_s26, %s1156_s25 }
   0x6   : > { %p187_p1 = scmp.eq.s32.totalorder %s186_s9, 0  ;;  %p200_p2 = scmp.eq.s32.totalorder %s1230_s28, 1 }
   0x7   : > { %p205_p3 = scmp.ne.s32.totalorder %s1156_s25, %s1152_s24  ;;  %p206_p4 = scmp.eq.s32.totalorder %s879_s29, 1 }
   0x8   : > { %s1245_s10 = scalar_select %p187_p1, %s1160_s26, %s189_s8  }
   0x9   : > { %p1247_p5 = por %p200_p2, %p199_p0  ;;  %p1251_p6 = por %p206_p4, %p205_p3 }
   0xa   : > { %p882_p7 = scmp.ge.s32.totalorder %s1164_s27, 1  ;;  %p263_p8 = scmp.lt.s32.totalorder %s1164_s27, 3 }
   0xc   : > { %p264_p9 = pnand %p882_p7, %p263_p8 }
   0xd   : > { %v344_v0 = vld [vmem:[%s1429_s4] sm:$0xff] (!%p264_p9)  ;;  %v345_v1 = vld [vmem:[%s1429_s4 + $0x8] sm:$0xff] (!%p264_p9)  ;;  %s884_s19 = sshll.u32 (!%p264_p9), %s1230_s28, 3  ;;  %v346_v5 = vld [vmem:[%s1429_s4 + $0x10] sm:$0xff] (!%p264_p9)  ;;  %vm348_vm0 = vcmask (!%p264_p9), 261120   ;;  %s920_s9 = sshll.u32 (!%p264_p9), %s1230_s28, 10 }
   0xe   : > { %267 = sbr.rel (%p264_p9) target bundleno = 279 (0x117), region = 48  ;;  %v332_v2 = vld [vmem:[%s1428_s3] sm:$0xff] (!%p264_p9)  ;;  %v1017_v3 = vpack.c.bf16 (!%p264_p9), %v345_v1, %v344_v0  ;;  %v333_v4 = vld [vmem:[%s1428_s3 + $0x8] sm:$0xff] (!%p264_p9)  ;;  %v347_v6 = vld [vmem:[%s1429_s4 + $0x18] sm:$0xff] (!%p264_p9)  ;;  %p306_p10 = scmp.lt.s32.totalorder (!%p264_p9), %s884_s19, 15 }
   0xf   : > { %v1025_v7 = vpack.c.bf16 (!%p264_p9), %v333_v4, %v332_v2  ;;  %v1021_v8 = vpack.c.bf16 (!%p264_p9), %v347_v6, %v346_v5  ;;  %v334_v9 = vld [vmem:[%s1428_s3 + $0x10] sm:$0xff] (!%p264_p9)  ;;  %v335_v10 = vld [vmem:[%s1428_s3 + $0x18] sm:$0xff] (!%p264_p9)  ;;  %v615_v12 = vld [vmem:[%s1430_s5] sm:$0xff] (!%p264_p9)  ;;  %s1376_s15 = scalar_lea.hbm (!%p264_p9), %s1432_s7, %s920_s9  ;;  %s1166_s17 = smov (!%p264_p9), [#allocation2]  }
  0x10   : > { %1018 = vmatprep.subr.bf16.mxu1 (!%p264_p9), %v1017_v3  ;;  %v1029_v11 = vpack.c.bf16 (!%p264_p9), %v335_v10, %v334_v9  ;;  %v616_v13 = vld [vmem:[%s1430_s5 + $0x8] sm:$0xff] (!%p264_p9)  ;;  %v617_v15 = vld [vmem:[%s1430_s5 + $0x10] sm:$0xff] (!%p264_p9)  ;;  %v618_v18 = vld [vmem:[%s1430_s5 + $0x18] sm:$0xff] (!%p264_p9)  ;;  %s1106_s18 = sshll.u32 (!%p264_p9), %s1166_s17, 4  ;;  %s1107_s18 = int_to_ptr.vmem [resolvable:$false] %s1106_s18 }
  0x11   : > { %1026 = vmatprep.subr.bf16.mxu0 (!%p264_p9), %v1025_v7  ;;  %1020 = vmatpush3.bf16.msra.mxu1 (!%p264_p9), %v1017_v3  ;;  %v1033_v14 = vpack.c.bf16 (!%p264_p9), %v616_v13, %v615_v12  ;;  %v1037_v22 = vpack.c.bf16 (!%p264_p9), %v618_v18, %v617_v15  ;;  %v914_v47 = vld [vmem:[%s1431_s6] ss:$0 sm:$0xff] (!%p264_p9) }
  0x12   : > { %1028 = vmatpush3.bf16.msra.mxu0 (!%p264_p9), %v1025_v7  ;;  %1022 = vmatprep.subr.bf16.mxu1 (!%p264_p9), %v1021_v8 }
  0x13   : > { %1030 = vmatprep.subr.bf16.mxu0 (!%p264_p9), %v1029_v11 }
  0x15   : > { %s1440_s19 = smov (!%p306_p10, %s884_s19), 15  ;;  %1024 = vmatpush3.bf16.msra.mxu1 %v1021_v8 }
  0x16   : > { %s885_s21 = sshll.u32 %s1440_s19, 3  ;;  %1032 = vmatpush3.bf16.msra.mxu0 %v1029_v11  ;;  %1041 = vmatprep.subr.bf16.mxu1 %v1025_v7 }
  0x17   : > { %s1291_s29 = scalar_lea.vmem %s1426_s1, %s885_s21  ;;  %s1296_s13 = scalar_lea.vmem %s1425_s0, %s885_s21  ;;  %1034 = vmatprep.subr.bf16.mxu0 %v1033_v14 }
  0x18   : > { %v336_v16 = vld [vmem:[%s1291_s29] sm:$0xff]  ;;  %v337_v19 = vld [vmem:[%s1291_s29 + $0x8] sm:$0xff]  ;;  %v338_v21 = vld [vmem:[%s1291_s29 + $0x10] sm:$0xff]  ;;  %s1316_s20 = scalar_lea.vmem %s1427_s2, %s885_s21  ;;  %s302_s21 = sand.u32 1, %s1156_s25  }
  0x19   : > { %v324_v17 = vld [vmem:[%s1296_s13] sm:$0xff]  ;;  %965 = vmatprep.mubr.msk.f32.mxu1 %vm348_vm0, %v336_v16  ;;  %v325_v20 = vld [vmem:[%s1296_s13 + $0x8] sm:$0xff]  ;;  %v326_v23 = vld [vmem:[%s1296_s13 + $0x10] sm:$0xff]  ;;  %s883_s22 = sshll.u32 %s302_s21, 6  ;;  %s1384_s28 = scalar_lea.sflag [#allocation3], %s302_s21 }
  0x1a   : > { %985 = vmatprep.mubr.msk.f32.mxu0 %vm348_vm0, %v324_v17  ;;  %966 = vmatmul.mubr.msk.f32.vlgmr.msra.gmra.mrb[0].mxu1 %vm348_vm0, %v337_v19  ;;  %v339_v24 = vld [vmem:[%s1291_s29 + $0x18] sm:$0xff]  ;;  %v340_v26 = vld [vmem:[%s1291_s29 + $0x20] sm:$0xff]  ;;  %v341_v28 = vld [vmem:[%s1291_s29 + $0x28] sm:$0xff]  ;;  %s1363_s8 = scalar_lea.vmem [#allocation2], %s883_s22 }
  0x1b   : > { %986 = vmatmul.mubr.msk.f32.vlgmr.msra.gmra.mrb[0].mxu0 %vm348_vm0, %v325_v20  ;;  %1043 = vmatpush3.bf16.msra.mxu1 %v1025_v7  ;;  %v327_v25 = vld [vmem:[%s1296_s13 + $0x18] sm:$0xff]  ;;  %v607_v27 = vld [vmem:[%s1316_s20] sm:$0xff]  ;;  %v608_v29 = vld [vmem:[%s1316_s20 + $0x8] sm:$0xff] }
  0x1c   : > { %1036 = vmatpush3.bf16.msra.mxu0 %v1033_v14  ;;  %968 = vmatprep.mubr.msk.f32.mxu1 %vm348_vm0, %v338_v21  ;;  %v342_v30 = vld [vmem:[%s1291_s29 + $0x30] sm:$0xff]  ;;  %v343_v32 = vld [vmem:[%s1291_s29 + $0x38] sm:$0xff]  ;;  %v328_v34 = vld [vmem:[%s1296_s13 + $0x20] sm:$0xff] }
  0x1d   : > { %988 = vmatprep.mubr.msk.f32.mxu0 %vm348_vm0, %v326_v23  ;;  %1038 = vmatprep.subr.bf16.mxu0 %v1037_v22  ;;  %v609_v31 = vld [vmem:[%s1316_s20 + $0x10] sm:$0xff]  ;;  %v610_v33 = vld [vmem:[%s1316_s20 + $0x18] sm:$0xff]  ;;  %v611_v35 = vld [vmem:[%s1316_s20 + $0x20] sm:$0xff] }
  0x1e   : > { %969 = vmatmul.mubr.msk.f32.gmra.mrb[2].mxu1 %vm348_vm0, %v339_v24  ;;  %1042 = vmatprep.subr.bf16.mxu1 %v1029_v11  ;;  %v329_v36 = vld [vmem:[%s1296_s13 + $0x28] sm:$0xff]  ;;  %v330_v38 = vld [vmem:[%s1296_s13 + $0x30] sm:$0xff]  ;;  %v331_v40 = vld [vmem:[%s1296_s13 + $0x38] sm:$0xff]  ;;  %s793_s13 = sshll.u32 %s1363_s8, 4  ;;  %s1378_s13 = int_to_ptr.vmem [resolvable:$true] %s793_s13 }
  0x1f   : > { %989 = vmatmul.mubr.msk.f32.gmra.mrb[2].mxu0 %vm348_vm0, %v327_v25  ;;  %971 = vmatprep.mubr.msk.f32.mxu1 %vm348_vm0, %v340_v26  ;;  %v612_v37 = vld [vmem:[%s1316_s20 + $0x28] sm:$0xff]  ;;  %v613_v39 = vld [vmem:[%s1316_s20 + $0x30] sm:$0xff]  ;;  %v614_v41 = vld [vmem:[%s1316_s20 + $0x38] sm:$0xff]  ;;  %s1102_s16 = scalar_lea.vmem %s1378_s13, 1024  ;;  %s1108_s20 = scalar_lea.vmem %s1107_s18, 2048 }
  0x20   : > { %1040 = vmatpush3.bf16.msra.mxu0 %v1037_v22  ;;  %1005 = vmatprep.mubr.msk.f32.mxu0 %vm348_vm0, %v607_v27  ;;  %p1103_p11 = scmp.ne.s32.totalorder %s1378_s13, %s1102_s16  ;;  %p1109_p0 = scmp.lt.s32.totalorder %s1378_s13, %s1107_s18 }
  0x21   : > { %1044 = vmatpush3.bf16.msra.mxu1 %v1029_v11  ;;  %p1110_p1 = scmp.lt.s32.totalorder %s1108_s20, %s1102_s16 }
  0x22   : > { %972 = vmatmul.mubr.msk.f32.gmra.mrb[4].mxu1 %vm348_vm0, %v341_v28  ;;  %p1104_p12 = pnand %p1103_p11, %p1247_p5 }
  0x23   : > { %1006 = vmatmul.mubr.msk.f32.vlgmr.msra.gmra.mrb[0].mxu0 %vm348_vm0, %v608_v29  ;;  %974 = vmatprep.mubr.msk.f32.mxu1 %vm348_vm0, %v342_v30  ;;  %p1111_p2 = por %p1110_p1, %p1109_p0 }
  0x24   : > { %1008 = vmatprep.mubr.msk.f32.mxu0 %vm348_vm0, %v609_v31  ;;  %p1105_p13 = pneg %p1104_p12 }
  0x26   : > { %975 = vmatmul.mubr.msk.f32.gmra.mrb[6].mxu1 %vm348_vm0, %v343_v32  ;;  %p1112_p3 = pnand %p1111_p2, %p1105_p13 }
  0x27   : > { %1009 = vmatmul.mubr.msk.f32.gmra.mrb[2].mxu0 %vm348_vm0, %v610_v33  ;;  %991 = vmatprep.mubr.msk.f32.mxu1 %vm348_vm0, %v328_v34 }
  0x28   : > { %1011 = vmatprep.mubr.msk.f32.mxu0 %vm348_vm0, %v611_v35 }
  0x2a   : > { %992 = vmatmul.mubr.msk.f32.vlgmr.msra.gmra.mrb[4].mxu1 %vm348_vm0, %v329_v36 }
  0x2b   : > { %1012 = vmatmul.mubr.msk.f32.gmra.mrb[4].mxu0 %vm348_vm0, %v612_v37  ;;  %994 = vmatprep.mubr.msk.f32.mxu1 %vm348_vm0, %v330_v38 }
  0x2c   : > { %1014 = vmatprep.mubr.msk.f32.mxu0 %vm348_vm0, %v613_v39 }
  0x2e   : > { %995 = vmatmul.mubr.msk.f32.gmra.mrb[6].mxu1 %vm348_vm0, %v331_v40 }
  0x2f   : > { %1015 = vmatmul.mubr.msk.f32.gmra.mrb[6].mxu0 %vm348_vm0, %v614_v41 }
  0xed   : > { %v967_v42 = vpop.f32.mrb[0].mxu1 }
  0xee   : > { %v439_v43 = vpop.f32.mrb[1].mxu1 }
  0xf1   : > { %v970_v44 = vpop.f32.mrb[2].mxu1 }
  0xf2   : > { %v449_v45 = vpop.f32.mrb[3].mxu1 }
  0xf6   : > { %v1007_v46 = vpop.f32.mrb[0].mxu0 }
  0xf7   : > { %v1045_v48 = vadd.f32 %v1007_v46, %v967_v42  ;;  %v709_v49 = vpop.f32.mrb[1].mxu0 }
  0xf8   : > { %v1046_v50 = vadd.f32 %v709_v49, %v439_v43 }
  0xf9   : > { %v764_v51 = vadd.f32 %v1045_v48, %v914_v47 }
  0xfa   : > { %v763_v52 = vadd.f32 %v1046_v50, %v914_v47  ;;  %v1010_v53 = vpop.f32.mrb[2].mxu0 }
  0xfb   : > { %772 = vst [vmem:[%s1363_s8 + $0x8] sm:$0xff] %v764_v51  ;;  %v1047_v54 = vadd.f32 %v1010_v53, %v970_v44  ;;  %v719_v55 = vpop.f32.mrb[3].mxu0 }
  0xfc   : > { %771 = vst [vmem:[%s1363_s8] sm:$0xff] %v763_v52  ;;  %v1048_v56 = vadd.f32 %v719_v55, %v449_v45 }
  0xfd   : > { %v766_v57 = vadd.f32 %v1047_v54, %v914_v47  ;;  %v993_v58 = vpop.f32.mrb[4].mxu1 }
  0xfe   : > { %v765_v59 = vadd.f32 %v1048_v56, %v914_v47  ;;  %v1013_v60 = vpop.f32.mrb[4].mxu0  ;;  %v588_v61 = vpop.f32.mrb[5].mxu1 }
  0xff   : > { %774 = vst [vmem:[%s1363_s8 + $0x18] sm:$0xff] %v766_v57  ;;  %v1049_v62 = vadd.f32 %v1013_v60, %v993_v58  ;;  %v729_v63 = vpop.f32.mrb[5].mxu0 }
 0x100   : > { %773 = vst [vmem:[%s1363_s8 + $0x10] sm:$0xff] %v765_v59  ;;  %v1050_v0 = vadd.f32 %v729_v63, %v588_v61 }
 0x101   : > { %v768_v1 = vadd.f32 %v1049_v62, %v914_v47  ;;  %v996_v2 = vpop.f32.mrb[6].mxu1 }
 0x102   : > { %v767_v3 = vadd.f32 %v1050_v0, %v914_v47  ;;  %v1016_v4 = vpop.f32.mrb[6].mxu0  ;;  %v598_v5 = vpop.f32.mrb[7].mxu1 }
 0x103   : > { %776 = vst [vmem:[%s1363_s8 + $0x28] sm:$0xff] %v768_v1  ;;  %v1051_v6 = vadd.f32 %v1016_v4, %v996_v2  ;;  %v739_v7 = vpop.f32.mrb[7].mxu0 }
 0x104   : > { %775 = vst [vmem:[%s1363_s8 + $0x20] sm:$0xff] %v767_v3  ;;  %v1052_v8 = vadd.f32 %v739_v7, %v598_v5 }
 0x105   : > { %v770_v9 = vadd.f32 %v1051_v6, %v914_v47 }
 0x106   : > { %v769_v10 = vadd.f32 %v1052_v8, %v914_v47 }
 0x107   : > { %778 = vst [vmem:[%s1363_s8 + $0x38] sm:$0xff] %v770_v9 }
 0x108   : > { %777 = vst [vmem:[%s1363_s8 + $0x30] sm:$0xff] %v769_v10 }
 0x109   : > { %1115 = shalt.err (!%p1112_p3)
}
 0x10a   : > { %s1116_s21 = scalar_lea.hbm %s1376_s15, 1024  ;;  %s1120_s29 = scalar_lea.hbm %s1432_s7, 2048 }
 0x10b   : > { %p1117_p4 = scmp.ne.s32.totalorder %s1376_s15, %s1116_s21  ;;  %p1121_p9 = scmp.lt.u32.totalorder %s1376_s15, %s1432_s7 }
 0x10c   : > { %p1122_p10 = scmp.lt.u32.totalorder %s1120_s29, %s1116_s21  ;;  %p1124_p12 = scmp.lt.u32.totalorder %s1116_s21, %s1376_s15 }
 0x10d   : > { %p1118_p7 = pnand %p1117_p4, %p1247_p5 }
 0x10e   : > { %p1123_p11 = por %p1122_p10, %p1121_p9 }
 0x10f   : > { %p1119_p8 = pneg %p1118_p7 }
 0x110   : > { %p1125_p13 = por %p1124_p12, %p1123_p11 }
 0x112   : > { %p1126_p0 = pnand %p1125_p13, %p1119_p8 }
 0x114   : > { %1129 = shalt.err (!%p1126_p0)
}
 0x115   : > { %s1167_s14 = smov 128   ;;  %s1168_s19 = smov 8  }
 0x116   : > { %1061 = dma.vmem_to_hbm [thread:$0]  (%p1247_p5), %s1378_s13, 1024, %s1376_s15, %s1384_s28, %s1167_s14, %s1167_s14, %s1168_s19  }
 0x117 PF: > { %p1067_p1 = scmp.ge.s32.totalorder %s1164_s27, 2  ;;  %s808_s16 = sand.u32 1, %s1152_s24  }
 0x118   : > { %s809_s17 = scalar_lea.sflag [#allocation3], %s808_s16 }
 0x119   : > { %p1064_p2 = pnand %p1067_p1, %p1251_p6 }
 0x11b   : > { %1147 = dma.done.wait (!%p1064_p2), %s809_s17, 1024  }
 0x11c   : > { %1149 = vsyncadd (!%p1064_p2), %s809_s17, 4294966272  ;;  %p17_p3 = scmp.ge.s32.totalorder %s1234_s30, 4   ;;  %s1435_s24 = smov %s1156_s25 }
 0x11d   : > { %s1436_s25 = smov %s1160_s26  ;;  %s1437_s26 = smov %s1245_s10 }
 0x11e   : > { %s1438_s27 = smov %s1234_s30  ;;  %19 = sbr.rel (!%p17_p3) target bundleno = 3 (0x3), region = 89 }
 0x125   :  { %814 = vsyncpa [#allocation3], 1 }
 0x126   :  { %816 = vsyncpa [#allocation3 + $0x1], 1 }

</bundles_post_ra>
